<compile_context>
chip_gen: v7x
topology: tpu7x:2x2x1
jax: 0.10.0
libtpu: 0.0.40
codegen_flags: <defaults>
</compile_context>

<pallas_src>
import functools

import numpy as np
import jax
import jax.numpy as jnp
from jax import lax
from jax.experimental import pallas as pl
from jax.experimental.pallas import tpu as pltpu


# ----------------------------------------------------------------------------
# Deterministic parameter initialisation (numpy mirror of the torch helpers).
# ----------------------------------------------------------------------------
def sparse_tensor_init(rng, M, N, C=1):
    """M x N dense matrix; each row has C non-zeros ~ U(-1, 1)."""
    W = np.zeros((M, N), dtype=np.float32)
    for i in range(M):
        idx = rng.choice(N, size=C, replace=False)
        W[i, idx] = 2.0 * rng.random(C).astype(np.float32) - 1.0
    return W


def sparse_recurrent_tensor_init(rng, M, C=1, distrib="uniform"):
    """M x M dense matrix; each column has C non-zeros."""
    assert M >= C
    W = np.zeros((M, M), dtype=np.float32)
    for i in range(M):
        idx = rng.choice(M, size=C, replace=False)
        if distrib == "uniform":
            vals = 2.0 * rng.random(C).astype(np.float32) - 1.0
        elif distrib == "normal":
            vals = rng.standard_normal(C).astype(np.float32) / np.sqrt(C)
        else:
            raise ValueError(distrib)
        W[idx, i] = vals
    return W


def spectral_norm_scaling(W, rho_desired):
    e = np.linalg.eigvals(W)
    rho_curr = np.max(np.abs(e))
    return W * (rho_desired / rho_curr)


def build_recurrent_kernel(rng, units, connectivity_recurrent, spectral_radius,
                           leaky, effective_rescaling, distrib="uniform"):
    W = sparse_recurrent_tensor_init(rng, units, C=connectivity_recurrent,
                                     distrib=distrib)
    if effective_rescaling and leaky != 1:
        I = np.eye(units, dtype=np.float32)
        W = W * leaky + I * (1 - leaky)
        W = spectral_norm_scaling(W, spectral_radius)
        W = (W + I * (leaky - 1)) * (1.0 / leaky)
    else:
        if distrib == "normal":
            W = spectral_radius * W
        elif distrib == "uniform" and connectivity_recurrent == units:
            W = (spectral_radius / np.sqrt(units)) * (6.0 / np.sqrt(12.0)) * W
        else:
            W = spectral_norm_scaling(W, spectral_radius)
    return W.astype(np.float32)


# ----------------------------------------------------------------------------
# Helpers.
# ----------------------------------------------------------------------------
def _round_up(x, m):
    return ((x + m - 1) // m) * m


def _tpu_generation_and_vmem():
    """Best-effort TPU generation + physical VMEM capacity (bytes)."""
    gen = None
    try:
        kind = jax.devices()[0].device_kind.lower()
        for g in (7, 6, 5, 4, 3, 2):
            if f"v{g}" in kind:
                gen = g
                break
    except Exception:
        pass
    cap = None
    try:
        cap = int(getattr(pltpu.get_tpu_info(), "vmem_capacity_bytes", 0))
    except Exception:
        cap = None
    if not cap or cap <= 0:
        # v7x: 64 MiB per TC; v5e/v6e: 128 MiB.  Unknown -> be conservative.
        cap = (128 << 20) if (gen is not None and gen <= 6) else (64 << 20)
    return gen, cap


def _max_tc_fitting(Bt, Up, w_itemsize, budget_bytes, tc_max):
    """Largest time-chunk whose VMEM footprint fits the budget."""
    fixed = Up * Up * w_itemsize + Bt * Up * 4 + (2 << 20)   # W (1 buf) + carry + slack
    per_t = 4 * Bt * Up * 4                                  # 2 bufs x (xproj + hs) per step
    tc = max(int(tc_max), 1)
    while tc > 1 and fixed + per_t * tc > budget_bytes:
        tc = max(1, tc // 2)
    return tc


# ----------------------------------------------------------------------------
# Pallas kernel: one reservoir layer, one (batch-tile, time-chunk) block.
# Only the recurrence runs here; the input projection is precomputed.
# ----------------------------------------------------------------------------
def _reservoir_kernel(xp_ref, w_ref, hs_ref, h_ref, *, leaky, tc, unroll):
    c = pl.program_id(1)                       # time-chunk axis (sequential)

    @pl.when(c == 0)
    def _():
        # init_hidden: zeros at the start of every batch tile's sequence.
        h_ref[...] = jnp.zeros_like(h_ref)

    def step(t, h):
        # pre = x_t @ K + b + h_{t-1} @ W   (x@K + b precomputed as xp_ref)
        # TODO(synk): keep W stationary on the MXU across the chunk via
        #             pltpu.matmul_push_rhs / matmul_acc_lhs / matmul_pop.
        pre = xp_ref[t] + jnp.dot(h.astype(w_ref.dtype), w_ref[...],
                                  preferred_element_type=jnp.float32)
        if leaky == 1.0:                       # model default: skip the blend
            h_new = jnp.tanh(pre)
        else:
            h_new = h * (1.0 - leaky) + jnp.tanh(pre) * leaky
        hs_ref[t] = h_new
        return h_new

    # Hidden state is carried in the persistent VMEM scratch across chunks.
    h_ref[...] = lax.fori_loop(0, tc, step, h_ref[...], unroll=unroll)


def reservoir_layer_forward_tm(x_tbd, Kp, Wp, bp, *, leaky, time_chunk,
                               n_btiles, vmem_cap):
    """One reservoir layer on pre-padded, time-major activations.

    x_tbd: (Tpad, Bp, Din) float32, Bp multiple of 8, Tpad multiple of
    time_chunk.  Kp/Wp/bp are pre-padded ((Din, Up), (Up, Up), (Up,)),
    Up a multiple of 128.  Returns padded states (Tpad, Bp, Up).
    """
    Tpad, Bp, _ = x_tbd.shape
    Up = Kp.shape[1]
    Tc = int(time_chunk)
    assert Tpad % Tc == 0 and Up % 128 == 0 and Bp % (8 * n_btiles) == 0

    # Hoisted input projection: one (Tpad*Bp, Din) x (Din, Up) MXU matmul,
    # emitted already padded (no extra jnp.pad round-trip through HBM).
    xproj = (x_tbd @ Kp + bp).astype(jnp.float32)

    n_chunks = Tpad // Tc
    Bt = Bp // n_btiles

    # Device-aware VMEM limit (never above physical capacity minus headroom).
    w_bytes = Up * Up * Wp.dtype.itemsize
    est = w_bytes + 4 * Tc * Bt * Up * 4 + Bt * Up * 4 + (2 << 20)
    vmem_limit = int(min(vmem_cap - (4 << 20),
                         max(est * 5 // 4 + (4 << 20), 16 << 20)))

    # Full unroll for small U; bounded unroll once U is large (vreg pressure).
    unroll = Tc if Up <= 256 else max(1, min(Tc, 8))

    kern = functools.partial(_reservoir_kernel, leaky=float(leaky), tc=Tc,
                             unroll=unroll)
    hs_pad = pl.pallas_call(
        kern,
        out_shape=jax.ShapeDtypeStruct((Tpad, Bp, Up), jnp.float32),
        grid_spec=pltpu.PrefetchScalarGridSpec(
            num_scalar_prefetch=0,
            grid=(n_btiles, n_chunks),
            in_specs=[
                # precomputed projection, one time chunk per grid step
                pl.BlockSpec((Tc, Bt, Up), lambda bi, c: (c, bi, 0)),
                # recurrent kernel: whole array resident in VMEM, one copy,
                # no per-step DMA and no double buffering.
                pl.BlockSpec(memory_space=pltpu.MemorySpace.VMEM),
            ],
            out_specs=pl.BlockSpec((Tc, Bt, Up), lambda bi, c: (c, bi, 0)),
            # hidden-state carry, persists across grid iterations
            scratch_shapes=[pltpu.VMEM((Bt, Up), jnp.float32)],
        ),
        compiler_params=pltpu.CompilerParams(
            dimension_semantics=("parallel", "arbitrary"),
            vmem_limit_bytes=vmem_limit),
    )(xproj, Wp)
    return hs_pad


# ----------------------------------------------------------------------------
# DeepReservoir (non-Euler ReservoirCell path: nonlin='tanh', alpha=0).
# ----------------------------------------------------------------------------
class DeepReservoirJax:
    def __init__(self, input_size=1, tot_units=100, n_layers=1, concat=False,
                 input_scaling=1.0, inter_scaling=1.0, spectral_radius=0.99,
                 leaky=1.0, connectivity_recurrent=10, connectivity_input=10,
                 connectivity_inter=10, bias_bool=True, effective_rescaling=True,
                 bias_scaling=None, distrib="uniform", seed=0):
        rng = np.random.default_rng(seed)
        self.concat = concat
        self.leaky = leaky

        layers_units = (tot_units // n_layers) if concat else tot_units
        units_list = [layers_units + tot_units % n_layers] + \
                     [layers_units] * (n_layers - 1)
        scalings = [input_scaling] + [inter_scaling] * (n_layers - 1)
        conn_in = [connectivity_input] + [connectivity_inter] * (n_layers - 1)

        self.layers = []
        in_size = input_size          # unpadded feature width fed to this layer
        in_size_padded = input_size   # (padded to Up of the previous layer)
        for li in range(n_layers):
            U = units_list[li]
            Up = _round_up(U, 128)
            sc = scalings[li]
            K = sparse_tensor_init(rng, in_size, U, min(conn_in[li], U)) * sc
            Wr = build_recurrent_kernel(rng, U, min(connectivity_recurrent, U),
                                        spectral_radius, leaky,
                                        effective_rescaling, distrib)
            if bias_bool:
                bsc = sc if bias_scaling is None else bias_scaling
                b = (2.0 * rng.random(U).astype(np.float32) - 1.0) * bsc
            else:
                b = np.zeros(U, dtype=np.float32)

            # Pre-pad parameters once (zero-padding keeps padded state exactly
            # 0); activations then stay padded between layers with no extra
            # HBM pad/slice copies.
            Kp = np.zeros((in_size_padded, Up), dtype=np.float32)
            Kp[:in_size, :U] = K
            Wp = np.zeros((Up, Up), dtype=np.float32)
            Wp[:U, :U] = Wr
            bp = np.zeros((Up,), dtype=np.float32)
            bp[:U] = b

            # bf16 recurrent kernel (f32 accumulate) once U is MXU-sized;
            # keep exact f32 semantics at small sizes.
            w_dtype = jnp.bfloat16 if Up >= 512 else jnp.float32

            self.layers.append(dict(
                K=jnp.asarray(Kp, jnp.float32),
                W=jnp.asarray(Wp, w_dtype),
                b=jnp.asarray(bp, jnp.float32),
                U=U, Up=Up, Din=in_size,
            ))
            in_size = U
            in_size_padded = Up

    def __call__(self, X):
        """X: (B, T, input_size). Returns (states (B,T,F), [h_last per layer])."""
        B, T, _ = X.shape

        gen, vmem_cap = _tpu_generation_and_vmem()

        # Batch tiling: split across TensorCores only on v7x (2 TCs); on
        # single-TC v5e/v6e a split just serializes tiny matmuls.
        Bp = _round_up(max(B, 1), 8)
        n_btiles = 2 if (gen is not None and gen >= 7 and Bp % 16 == 0) else 1
        Bt = Bp // n_btiles

        # Time-chunk target per generation, shrunk until every layer's VMEM
        # footprint fits (device capacity minus headroom).
        target_tc = 64 if (gen is not None and gen <= 6) else 32
        budget = max(vmem_cap - (8 << 20), 8 << 20)
        tc_cap = target_tc
        for lyr in self.layers:
            tc_cap = min(tc_cap, _max_tc_fitting(Bt, lyr["Up"],
                                                 lyr["W"].dtype.itemsize,
                                                 budget, target_tc))
        tc_cap = max(1, min(tc_cap, T))

        # Pad T up to a multiple of Tc (balanced chunks), instead of falling
        # back to Tc=1 for awkward T.
        n_chunks = -(-T // tc_cap)
        Tc = -(-T // n_chunks)
        Tpad = Tc * n_chunks

        # One transpose + one pad for the whole stack; layers stay time-major
        # and padded so no per-layer activation pad/slice copies are needed.
        x = jnp.transpose(X.astype(jnp.float32), (1, 0, 2))       # (T, B, D)
        x = jnp.pad(x, ((0, Tpad - T), (0, Bp - B), (0, 0)))

        states_tm_pad = []
        for lyr in self.layers:
            x = reservoir_layer_forward_tm(x, lyr["K"], lyr["W"], lyr["b"],
                                           leaky=self.leaky, time_chunk=Tc,
                                           n_btiles=n_btiles,
                                           vmem_cap=vmem_cap)
            states_tm_pad.append(x)

        # Slice back to real shapes exactly once at the very end.
        states_last = [hs[T - 1, :B, :lyr["U"]]
                       for hs, lyr in zip(states_tm_pad, self.layers)]
        if self.concat:
            out_tm = jnp.concatenate(
                [hs[:T, :B, :lyr["U"]]
                 for hs, lyr in zip(states_tm_pad, self.layers)], axis=2)
        else:
            out_tm = states_tm_pad[-1][:T, :B, :self.layers[-1]["U"]]
        return jnp.transpose(out_tm, (1, 0, 2)), states_last


# ----------------------------------------------------------------------------
# Pure-JAX reference (lax.scan) for a correctness check.
# ----------------------------------------------------------------------------
def _reference_layer(x_btd, K, W, b, leaky):
    B = x_btd.shape[0]
    U = K.shape[1]

    def step(h, xt):
        out = jnp.tanh(xt @ K + b + h @ W)
        h_new = h * (1.0 - leaky) + out * leaky
        return h_new, h_new

    h0 = jnp.zeros((B, U), jnp.float32)
    h_last, hs = jax.lax.scan(step, h0, jnp.transpose(x_btd, (1, 0, 2)))
    return jnp.transpose(hs, (1, 0, 2)), h_last


if __name__ == "__main__":
    B, T, D_IN = 2, 8, 4
    TOT_UNITS, N_LAYERS = 32, 2

    model = DeepReservoirJax(input_size=D_IN, tot_units=TOT_UNITS,
                             n_layers=N_LAYERS, concat=False,
                             connectivity_input=4, connectivity_inter=4,
                             connectivity_recurrent=10, seed=0)

    key = jax.random.PRNGKey(0)
    X = jax.random.normal(key, (B, T, D_IN), dtype=jnp.float32)

    states, states_last = model(X)
    states = jax.block_until_ready(states)
    states_last = [jax.block_until_ready(h) for h in states_last]

    # correctness check vs. pure-JAX scan reference (unpadded parameters)
    Xr = X
    for lyr in model.layers:
        K = jnp.asarray(lyr["K"][:lyr["Din"], :lyr["U"]], jnp.float32)
        W = jnp.asarray(lyr["W"][:lyr["U"], :lyr["U"]], jnp.float32)
        b = jnp.asarray(lyr["b"][:lyr["U"]], jnp.float32)
        Xr, h_ref = _reference_layer(Xr, K, W, b, model.leaky)
    np.testing.assert_allclose(np.asarray(states), np.asarray(Xr),
                               rtol=1e-5, atol=1e-5)
    np.testing.assert_allclose(np.asarray(states_last[-1]), np.asarray(h_ref),
                               rtol=1e-5, atol=1e-5)

    assert states.shape == (B, T, TOT_UNITS)
    assert len(states_last) == N_LAYERS
    print("KERNEL_OK")
</pallas_src>

<mosaic_0001>
module attributes {stable_mosaic.version = 11 : i64} {
  func.func @_reservoir_kernel(%arg0: i32, %arg1: i32, %arg2: memref<8x8x128xf32, #tpu.memory_space<vmem>>, %arg3: memref<128x128xf32, #tpu.memory_space<vmem>>, %arg4: memref<8x8x128xf32, #tpu.memory_space<vmem>>, %arg5: memref<8x128xf32, #tpu.memory_space<vmem>>) attributes {dimension_semantics = [#tpu.dimension_semantics<parallel>, #tpu.dimension_semantics<arbitrary>], iteration_bounds = array<i64: 1, 1>, scalar_prefetch = 0 : i64, scratch_operands = 1 : i64, tpu.core_type = #tpu.core_type<tc>, window_params = [{transform_indices = @transform_0, window_bounds = array<i64: 8, 8, 128>}, {pipeline_mode = #tpu.pipeline_mode<synchronous>, transform_indices = @transform_1, window_bounds = array<i64: 128, 128>}, {transform_indices = @transform_2, window_bounds = array<i64: 8, 8, 128>}]} {
    %c0_i32 = arith.constant 0 : i32
    %0 = arith.cmpi eq, %arg1, %c0_i32 : i32
    %1 = arith.extui %0 : i1 to i32
    %c0_i32_0 = arith.constant 0 : i32
    %2 = arith.cmpi ne, %1, %c0_i32_0 : i32
    scf.if %2 {
      %cst_60 = arith.constant 0.000000e+00 : f32
      %93 = vector.broadcast %cst_60 : f32 to vector<8x128xf32>
      %c0_61 = arith.constant 0 : index
      %c0_62 = arith.constant 0 : index
      %94 = vector.load %arg5[%c0_61, %c0_62] : memref<8x128xf32, #tpu.memory_space<vmem>>, vector<8x128xf32>
      tpu.vector_store %arg5[%c0_61, %c0_62], %93 {strides = array<i32>} : memref<8x128xf32, #tpu.memory_space<vmem>>, vector<8x128xf32>,
    } else {
    }
    %c0 = arith.constant 0 : index
    %c0_1 = arith.constant 0 : index
    %3 = vector.load %arg5[%c0, %c0_1] : memref<8x128xf32, #tpu.memory_space<vmem>>, vector<8x128xf32>
    %c0_i32_2 = arith.constant 0 : i32
    %4 = arith.index_cast %c0_i32_2 : i32 to index
    %c0_3 = arith.constant 0 : index
    %c0_4 = arith.constant 0 : index
    %5 = vector.load %arg2[%4, %c0_3, %c0_4] : memref<8x8x128xf32, #tpu.memory_space<vmem>>, vector<1x8x128xf32>
    %6 = vector.shape_cast %5 : vector<1x8x128xf32> to vector<8x128xf32>
    %c0_5 = arith.constant 0 : index
    %c0_6 = arith.constant 0 : index
    %7 = vector.load %arg3[%c0_5, %c0_6] : memref<128x128xf32, #tpu.memory_space<vmem>>, vector<128x128xf32>
    %cst = arith.constant dense<0.000000e+00> : vector<8x128xf32>
    %8 = tpu.matmul %3, %7, %cst {dimension_numbers = #tpu.dot_dimension_numbers<[1], [0], [0], [1], [0, 0, 1, 1], [], []>} : vector<8x128xf32>, vector<128x128xf32>, vector<8x128xf32> -> vector<8x128xf32>
    %9 = arith.addf %6, %8 : vector<8x128xf32>
    %10 = math.tanh %9 : vector<8x128xf32>
    %11 = arith.index_cast %c0_i32_2 : i32 to index
    %c0_7 = arith.constant 0 : index
    %c0_8 = arith.constant 0 : index
    %12 = vector.load %arg4[%11, %c0_7, %c0_8] : memref<8x8x128xf32, #tpu.memory_space<vmem>>, vector<1x8x128xf32>
    %13 = vector.shape_cast %12 : vector<1x8x128xf32> to vector<8x128xf32>
    %14 = vector.shape_cast %10 : vector<8x128xf32> to vector<1x8x128xf32>
    tpu.vector_store %arg4[%11, %c0_7, %c0_8], %14 {strides = array<i32>} : memref<8x8x128xf32, #tpu.memory_space<vmem>>, vector<1x8x128xf32>,
    %c1_i32 = arith.constant 1 : i32
    %15 = arith.index_cast %c1_i32 : i32 to index
    %c0_9 = arith.constant 0 : index
    %c0_10 = arith.constant 0 : index
    %16 = vector.load %arg2[%15, %c0_9, %c0_10] : memref<8x8x128xf32, #tpu.memory_space<vmem>>, vector<1x8x128xf32>
    %17 = vector.shape_cast %16 : vector<1x8x128xf32> to vector<8x128xf32>
    %c0_11 = arith.constant 0 : index
    %c0_12 = arith.constant 0 : index
    %18 = vector.load %arg3[%c0_11, %c0_12] : memref<128x128xf32, #tpu.memory_space<vmem>>, vector<128x128xf32>
    %cst_13 = arith.constant dense<0.000000e+00> : vector<8x128xf32>
    %19 = tpu.matmul %10, %18, %cst_13 {dimension_numbers = #tpu.dot_dimension_numbers<[1], [0], [0], [1], [0, 0, 1, 1], [], []>} : vector<8x128xf32>, vector<128x128xf32>, vector<8x128xf32> -> vector<8x128xf32>
    %20 = arith.addf %17, %19 : vector<8x128xf32>
    %21 = math.tanh %20 : vector<8x128xf32>
    %22 = arith.index_cast %c1_i32 : i32 to index
    %c0_14 = arith.constant 0 : index
    %c0_15 = arith.constant 0 : index
    %23 = vector.load %arg4[%22, %c0_14, %c0_15] : memref<8x8x128xf32, #tpu.memory_space<vmem>>, vector<1x8x128xf32>
    %24 = vector.shape_cast %23 : vector<1x8x128xf32> to vector<8x128xf32>
    %25 = vector.shape_cast %21 : vector<8x128xf32> to vector<1x8x128xf32>
    tpu.vector_store %arg4[%22, %c0_14, %c0_15], %25 {strides = array<i32>} : memref<8x8x128xf32, #tpu.memory_space<vmem>>, vector<1x8x128xf32>,
    %c2_i32 = arith.constant 2 : i32
    %26 = arith.index_cast %c2_i32 : i32 to index
    %c0_16 = arith.constant 0 : index
    %c0_17 = arith.constant 0 : index
    %27 = vector.load %arg2[%26, %c0_16, %c0_17] : memref<8x8x128xf32, #tpu.memory_space<vmem>>, vector<1x8x128xf32>
    %28 = vector.shape_cast %27 : vector<1x8x128xf32> to vector<8x128xf32>
    %c0_18 = arith.constant 0 : index
    %c0_19 = arith.constant 0 : index
    %29 = vector.load %arg3[%c0_18, %c0_19] : memref<128x128xf32, #tpu.memory_space<vmem>>, vector<128x128xf32>
    %cst_20 = arith.constant dense<0.000000e+00> : vector<8x128xf32>
    %30 = tpu.matmul %21, %29, %cst_20 {dimension_numbers = #tpu.dot_dimension_numbers<[1], [0], [0], [1], [0, 0, 1, 1], [], []>} : vector<8x128xf32>, vector<128x128xf32>, vector<8x128xf32> -> vector<8x128xf32>
    %31 = arith.addf %28, %30 : vector<8x128xf32>
    %32 = math.tanh %31 : vector<8x128xf32>
    %33 = arith.index_cast %c2_i32 : i32 to index
    %c0_21 = arith.constant 0 : index
    %c0_22 = arith.constant 0 : index
    %34 = vector.load %arg4[%33, %c0_21, %c0_22] : memref<8x8x128xf32, #tpu.memory_space<vmem>>, vector<1x8x128xf32>
    %35 = vector.shape_cast %34 : vector<1x8x128xf32> to vector<8x128xf32>
    %36 = vector.shape_cast %32 : vector<8x128xf32> to vector<1x8x128xf32>
    tpu.vector_store %arg4[%33, %c0_21, %c0_22], %36 {strides = array<i32>} : memref<8x8x128xf32, #tpu.memory_space<vmem>>, vector<1x8x128xf32>,
    %c3_i32 = arith.constant 3 : i32
    %37 = arith.index_cast %c3_i32 : i32 to index
    %c0_23 = arith.constant 0 : index
    %c0_24 = arith.constant 0 : index
    %38 = vector.load %arg2[%37, %c0_23, %c0_24] : memref<8x8x128xf32, #tpu.memory_space<vmem>>, vector<1x8x128xf32>
    %39 = vector.shape_cast %38 : vector<1x8x128xf32> to vector<8x128xf32>
    %c0_25 = arith.constant 0 : index
    %c0_26 = arith.constant 0 : index
    %40 = vector.load %arg3[%c0_25, %c0_26] : memref<128x128xf32, #tpu.memory_space<vmem>>, vector<128x128xf32>
    %cst_27 = arith.constant dense<0.000000e+00> : vector<8x128xf32>
    %41 = tpu.matmul %32, %40, %cst_27 {dimension_numbers = #tpu.dot_dimension_numbers<[1], [0], [0], [1], [0, 0, 1, 1], [], []>} : vector<8x128xf32>, vector<128x128xf32>, vector<8x128xf32> -> vector<8x128xf32>
    %42 = arith.addf %39, %41 : vector<8x128xf32>
    %43 = math.tanh %42 : vector<8x128xf32>
    %44 = arith.index_cast %c3_i32 : i32 to index
    %c0_28 = arith.constant 0 : index
    %c0_29 = arith.constant 0 : index
    %45 = vector.load %arg4[%44, %c0_28, %c0_29] : memref<8x8x128xf32, #tpu.memory_space<vmem>>, vector<1x8x128xf32>
    %46 = vector.shape_cast %45 : vector<1x8x128xf32> to vector<8x128xf32>
    %47 = vector.shape_cast %43 : vector<8x128xf32> to vector<1x8x128xf32>
    tpu.vector_store %arg4[%44, %c0_28, %c0_29], %47 {strides = array<i32>} : memref<8x8x128xf32, #tpu.memory_space<vmem>>, vector<1x8x128xf32>,
    %c4_i32 = arith.constant 4 : i32
    %48 = arith.index_cast %c4_i32 : i32 to index
    %c0_30 = arith.constant 0 : index
    %c0_31 = arith.constant 0 : index
    %49 = vector.load %arg2[%48, %c0_30, %c0_31] : memref<8x8x128xf32, #tpu.memory_space<vmem>>, vector<1x8x128xf32>
    %50 = vector.shape_cast %49 : vector<1x8x128xf32> to vector<8x128xf32>
    %c0_32 = arith.constant 0 : index
    %c0_33 = arith.constant 0 : index
    %51 = vector.load %arg3[%c0_32, %c0_33] : memref<128x128xf32, #tpu.memory_space<vmem>>, vector<128x128xf32>
    %cst_34 = arith.constant dense<0.000000e+00> : vector<8x128xf32>
    %52 = tpu.matmul %43, %51, %cst_34 {dimension_numbers = #tpu.dot_dimension_numbers<[1], [0], [0], [1], [0, 0, 1, 1], [], []>} : vector<8x128xf32>, vector<128x128xf32>, vector<8x128xf32> -> vector<8x128xf32>
    %53 = arith.addf %50, %52 : vector<8x128xf32>
    %54 = math.tanh %53 : vector<8x128xf32>
    %55 = arith.index_cast %c4_i32 : i32 to index
    %c0_35 = arith.constant 0 : index
    %c0_36 = arith.constant 0 : index
    %56 = vector.load %arg4[%55, %c0_35, %c0_36] : memref<8x8x128xf32, #tpu.memory_space<vmem>>, vector<1x8x128xf32>
    %57 = vector.shape_cast %56 : vector<1x8x128xf32> to vector<8x128xf32>
    %58 = vector.shape_cast %54 : vector<8x128xf32> to vector<1x8x128xf32>
    tpu.vector_store %arg4[%55, %c0_35, %c0_36], %58 {strides = array<i32>} : memref<8x8x128xf32, #tpu.memory_space<vmem>>, vector<1x8x128xf32>,
    %c5_i32 = arith.constant 5 : i32
    %59 = arith.index_cast %c5_i32 : i32 to index
    %c0_37 = arith.constant 0 : index
    %c0_38 = arith.constant 0 : index
    %60 = vector.load %arg2[%59, %c0_37, %c0_38] : memref<8x8x128xf32, #tpu.memory_space<vmem>>, vector<1x8x128xf32>
    %61 = vector.shape_cast %60 : vector<1x8x128xf32> to vector<8x128xf32>
    %c0_39 = arith.constant 0 : index
    %c0_40 = arith.constant 0 : index
    %62 = vector.load %arg3[%c0_39, %c0_40] : memref<128x128xf32, #tpu.memory_space<vmem>>, vector<128x128xf32>
    %cst_41 = arith.constant dense<0.000000e+00> : vector<8x128xf32>
    %63 = tpu.matmul %54, %62, %cst_41 {dimension_numbers = #tpu.dot_dimension_numbers<[1], [0], [0], [1], [0, 0, 1, 1], [], []>} : vector<8x128xf32>, vector<128x128xf32>, vector<8x128xf32> -> vector<8x128xf32>
    %64 = arith.addf %61, %63 : vector<8x128xf32>
    %65 = math.tanh %64 : vector<8x128xf32>
    %66 = arith.index_cast %c5_i32 : i32 to index
    %c0_42 = arith.constant 0 : index
    %c0_43 = arith.constant 0 : index
    %67 = vector.load %arg4[%66, %c0_42, %c0_43] : memref<8x8x128xf32, #tpu.memory_space<vmem>>, vector<1x8x128xf32>
    %68 = vector.shape_cast %67 : vector<1x8x128xf32> to vector<8x128xf32>
    %69 = vector.shape_cast %65 : vector<8x128xf32> to vector<1x8x128xf32>
    tpu.vector_store %arg4[%66, %c0_42, %c0_43], %69 {strides = array<i32>} : memref<8x8x128xf32, #tpu.memory_space<vmem>>, vector<1x8x128xf32>,
    %c6_i32 = arith.constant 6 : i32
    %70 = arith.index_cast %c6_i32 : i32 to index
    %c0_44 = arith.constant 0 : index
    %c0_45 = arith.constant 0 : index
    %71 = vector.load %arg2[%70, %c0_44, %c0_45] : memref<8x8x128xf32, #tpu.memory_space<vmem>>, vector<1x8x128xf32>
    %72 = vector.shape_cast %71 : vector<1x8x128xf32> to vector<8x128xf32>
    %c0_46 = arith.constant 0 : index
    %c0_47 = arith.constant 0 : index
    %73 = vector.load %arg3[%c0_46, %c0_47] : memref<128x128xf32, #tpu.memory_space<vmem>>, vector<128x128xf32>
    %cst_48 = arith.constant dense<0.000000e+00> : vector<8x128xf32>
    %74 = tpu.matmul %65, %73, %cst_48 {dimension_numbers = #tpu.dot_dimension_numbers<[1], [0], [0], [1], [0, 0, 1, 1], [], []>} : vector<8x128xf32>, vector<128x128xf32>, vector<8x128xf32> -> vector<8x128xf32>
    %75 = arith.addf %72, %74 : vector<8x128xf32>
    %76 = math.tanh %75 : vector<8x128xf32>
    %77 = arith.index_cast %c6_i32 : i32 to index
    %c0_49 = arith.constant 0 : index
    %c0_50 = arith.constant 0 : index
    %78 = vector.load %arg4[%77, %c0_49, %c0_50] : memref<8x8x128xf32, #tpu.memory_space<vmem>>, vector<1x8x128xf32>
    %79 = vector.shape_cast %78 : vector<1x8x128xf32> to vector<8x128xf32>
    %80 = vector.shape_cast %76 : vector<8x128xf32> to vector<1x8x128xf32>
    tpu.vector_store %arg4[%77, %c0_49, %c0_50], %80 {strides = array<i32>} : memref<8x8x128xf32, #tpu.memory_space<vmem>>, vector<1x8x128xf32>,
    %c7_i32 = arith.constant 7 : i32
    %81 = arith.index_cast %c7_i32 : i32 to index
    %c0_51 = arith.constant 0 : index
    %c0_52 = arith.constant 0 : index
    %82 = vector.load %arg2[%81, %c0_51, %c0_52] : memref<8x8x128xf32, #tpu.memory_space<vmem>>, vector<1x8x128xf32>
    %83 = vector.shape_cast %82 : vector<1x8x128xf32> to vector<8x128xf32>
    %c0_53 = arith.constant 0 : index
    %c0_54 = arith.constant 0 : index
    %84 = vector.load %arg3[%c0_53, %c0_54] : memref<128x128xf32, #tpu.memory_space<vmem>>, vector<128x128xf32>
    %cst_55 = arith.constant dense<0.000000e+00> : vector<8x128xf32>
    %85 = tpu.matmul %76, %84, %cst_55 {dimension_numbers = #tpu.dot_dimension_numbers<[1], [0], [0], [1], [0, 0, 1, 1], [], []>} : vector<8x128xf32>, vector<128x128xf32>, vector<8x128xf32> -> vector<8x128xf32>
    %86 = arith.addf %83, %85 : vector<8x128xf32>
    %87 = math.tanh %86 : vector<8x128xf32>
    %88 = arith.index_cast %c7_i32 : i32 to index
    %c0_56 = arith.constant 0 : index
    %c0_57 = arith.constant 0 : index
    %89 = vector.load %arg4[%88, %c0_56, %c0_57] : memref<8x8x128xf32, #tpu.memory_space<vmem>>, vector<1x8x128xf32>
    %90 = vector.shape_cast %89 : vector<1x8x128xf32> to vector<8x128xf32>
    %91 = vector.shape_cast %87 : vector<8x128xf32> to vector<1x8x128xf32>
    tpu.vector_store %arg4[%88, %c0_56, %c0_57], %91 {strides = array<i32>} : memref<8x8x128xf32, #tpu.memory_space<vmem>>, vector<1x8x128xf32>,
    %c8_i32 = arith.constant 8 : i32
    %c0_58 = arith.constant 0 : index
    %c0_59 = arith.constant 0 : index
    %92 = vector.load %arg5[%c0_58, %c0_59] : memref<8x128xf32, #tpu.memory_space<vmem>>, vector<8x128xf32>
    tpu.vector_store %arg5[%c0_58, %c0_59], %87 {strides = array<i32>} : memref<8x128xf32, #tpu.memory_space<vmem>>, vector<8x128xf32>,
    return
  }
  func.func @transform_0(%arg0: i32, %arg1: i32) -> (i32, i32, i32) {
    %c0_i32 = arith.constant 0 : i32
    %c0_i32_0 = arith.constant 0 : i32
    return %arg1, %arg0, %c0_i32 : i32, i32, i32
  }
  func.func @transform_1(%arg0: i32, %arg1: i32) -> (i32, i32) {
    %c0_i32 = arith.constant 0 : i32
    %c0_i32_0 = arith.constant 0 : i32
    %c0_i32_1 = arith.constant 0 : i32
    return %c0_i32, %c0_i32_0 : i32, i32
  }
  func.func @transform_2(%arg0: i32, %arg1: i32) -> (i32, i32, i32) {
    %c0_i32 = arith.constant 0 : i32
    %c0_i32_0 = arith.constant 0 : i32
    return %arg1, %arg0, %c0_i32 : i32, i32, i32
  }
}

</mosaic_0001>

<bundles_post_ra>
// kernel: tpu_custom_call.1
= control target key start
LH: loop header
LB: loop body
LE: loop exit
PB: predicated region body
PF: predicated region fallthrough
CT: control target
= control target key end

     0   :  { %7 = vsyncpa [#allocation4], 0  ;;  %s1732_s0 = inlined_call_operand.hbm [shape: f32[8,8,128], index: 0, kind: input, shape index: {}]   ;;  %s1733_s1 = inlined_call_operand.hbm [shape: f32[128,128], index: 1, kind: input, shape index: {}]   ;;  %s1734_s2 = inlined_call_operand.hbm [shape: f32[8,8,128], index: 2, kind: output, shape index: {}]  }
   0x1   :  { %8 = vsyncpa [#allocation7], 0 }
   0x2   :  { %9 = vsyncpa [#allocation5], 0  ;;  %s1503_s9 = smov [#allocation3]   ;;  %s1431_s13 = scalar_lea.hbm %s1732_s0, 1024 }
   0x3   :  { %s15_s10 = sshll.u32 %s1503_s9, 4  ;;  %p1432_p0 = scmp.ne.s32.totalorder %s1732_s0, %s1431_s13  ;;  %s16_s10 = int_to_ptr.vmem [resolvable:$true] %s15_s10 }
   0x4   :  { %p1435_p1 = scmp.lt.u32.totalorder %s1431_s13, %s1732_s0 }
   0x6   :  { %p1437_p2 = pnand %p1435_p1, %p1432_p0 }
   0x8   :  { %1440 = shalt.err (!%p1437_p2)
}
   0x9   :  { %s1441_s18 = scalar_lea.vmem %s16_s10, 1024  ;;  %p1446_p4 = scmp.lt.s32.totalorder %s16_s10, %s16_s10 }
   0xa   :  { %p1442_p3 = scmp.ne.s32.totalorder %s16_s10, %s1441_s18  ;;  %p1447_p5 = scmp.lt.s32.totalorder %s1441_s18, %s1441_s18 }
   0xc   :  { %p1448_p6 = por %p1447_p5, %p1446_p4 }
   0xe   :  { %p1449_p7 = pnand %p1448_p6, %p1442_p3 }
  0x10   :  { %1452 = shalt.err (!%p1449_p7)
}
  0x11   :  { %s1504_s19 = smov 128   ;;  %s1505_s20 = smov 8  }
  0x12   :  { %21 = dma.hbm_to_vmem [thread:$0]  %s1732_s0, 1024, %s16_s10, [#allocation4], %s1504_s19, %s1504_s19, %s1505_s20  }
  0x13   :  { %s1506_s23 = smov [#allocation6]   ;;  %s1453_s27 = scalar_lea.hbm %s1733_s1, 2048 }
  0x14   :  { %s27_s24 = sshll.u32 %s1506_s23, 4  ;;  %p1454_p8 = scmp.ne.s32.totalorder %s1733_s1, %s1453_s27  ;;  %s28_s24 = int_to_ptr.vmem [resolvable:$true] %s27_s24 }
  0x15   :  { %p1457_p9 = scmp.lt.u32.totalorder %s1453_s27, %s1733_s1 }
  0x17   :  { %p1459_p10 = pnand %p1457_p9, %p1454_p8 }
  0x19   :  { %1462 = shalt.err (!%p1459_p10)
}
  0x1a   :  { %s1463_s4 = scalar_lea.vmem %s28_s24, 2048  ;;  %p1468_p12 = scmp.lt.s32.totalorder %s28_s24, %s28_s24 }
  0x1b   :  { %p1464_p11 = scmp.ne.s32.totalorder %s28_s24, %s1463_s4  ;;  %p1469_p13 = scmp.lt.s32.totalorder %s1463_s4, %s1463_s4 }
  0x1d   :  { %p1470_p0 = por %p1469_p13, %p1468_p12 }
  0x1f   :  { %p1471_p1 = pnand %p1470_p0, %p1464_p11 }
  0x21   :  { %1474 = shalt.err (!%p1471_p1)
}
  0x22   :  { %33 = dma.hbm_to_vmem [thread:$0]  %s1733_s1, 2048, %s28_s24, [#allocation7], %s1504_s19, %s1504_s19, %s1505_s20  }
  0x23   :  { %1497 = dma.done.wait [#allocation4], 1024  }
  0x24   :  { %1498 = vsyncadd [#allocation4], 4294966272 }
  0x25   :  { %1499 = dma.done.wait [#allocation7], 2048  }
  0x26   :  { %1500 = vsyncadd [#allocation7], 4294965248  ;;  %v1507_v0 = vmov 0.0|0.0   ;;  %vm1508_vm0 = vmmov 0   ;;  %v1509_v1 = vmov 0.0   ;;  %v47_v2 = vld [vmem:[#allocation6] sm:$0xff] }
  0x27   :  { %1215 = vmatprep.subr.bf16.mxu0 %v1507_v0  ;;  %967 = vmatprep.mubr.msk.f32.mxu0 %vm1508_vm0, %v1509_v1  ;;  %v48_v3 = vld [vmem:[#allocation6 + $0x8] sm:$0xff]  ;;  %v49_v4 = vld [vmem:[#allocation6 + $0x10] sm:$0xff]  ;;  %v50_v6 = vld [vmem:[#allocation6 + $0x18] sm:$0xff]  ;;  %s1510_s1 = smov [#allocation8]  }
  0x28   :  { %1239 = vmatprep.subr.bf16.mxu1 %v1507_v0  ;;  %1002 = vmatprep.mubr.msk.f32.mxu1 %vm1508_vm0, %v1509_v1  ;;  %v1562_v5 = vpack.c.bf16 %v48_v3, %v47_v2  ;;  %v1565_v7 = vpack.c.bf16 %v50_v6, %v49_v4  ;;  %v51_v8 = vld [vmem:[#allocation6 + $0x20] sm:$0xff]  ;;  %v52_v9 = vld [vmem:[#allocation6 + $0x28] sm:$0xff]  ;;  %v53_v11 = vld [vmem:[#allocation6 + $0x30] sm:$0xff]  ;;  %s786_s6 = sshll.u32 %s1510_s1, 4  ;;  %s787_s6 = int_to_ptr.vmem [resolvable:$true] %s786_s6 }
  0x29   :  { %v1571_v10 = vpack.c.bf16 %v52_v9, %v51_v8  ;;  %v54_v12 = vld [vmem:[#allocation6 + $0x38] sm:$0xff]  ;;  %v55_v14 = vld [vmem:[#allocation6 + $0x40] sm:$0xff]  ;;  %v56_v15 = vld [vmem:[#allocation6 + $0x48] sm:$0xff]  ;;  %s1475_s7 = scalar_lea.vmem %s787_s6, 1024  ;;  %p1480_p3 = scmp.lt.s32.totalorder %s787_s6, %s787_s6 }
  0x2a   :  { %1217 = vmatpush3.bf16.msra.mxu0 %v1562_v5  ;;  %1241 = vmatpush3.bf16.msra.mxu1 %v1562_v5  ;;  %v1577_v13 = vpack.c.bf16 %v54_v12, %v53_v11  ;;  %v1583_v16 = vpack.c.bf16 %v56_v15, %v55_v14  ;;  %v57_v17 = vld [vmem:[#allocation6 + $0x50] sm:$0xff]  ;;  %v58_v18 = vld [vmem:[#allocation6 + $0x58] sm:$0xff]  ;;  %v59_v20 = vld [vmem:[#allocation6 + $0x60] sm:$0xff]  ;;  %p1476_p2 = scmp.ne.s32.totalorder %s787_s6, %s1475_s7  ;;  %p1481_p4 = scmp.lt.s32.totalorder %s1475_s7, %s1475_s7 }
  0x2b   :  { %1218 = vmatprep.subr.bf16.mxu0 %v1507_v0  ;;  %1242 = vmatprep.subr.bf16.mxu1 %v1507_v0  ;;  %v1589_v19 = vpack.c.bf16 %v58_v18, %v57_v17  ;;  %v60_v21 = vld [vmem:[#allocation6 + $0x68] sm:$0xff]  ;;  %v61_v23 = vld [vmem:[#allocation6 + $0x70] sm:$0xff]  ;;  %v62_v24 = vld [vmem:[#allocation6 + $0x78] sm:$0xff] }
  0x2c   :  { %v1595_v22 = vpack.c.bf16 %v60_v21, %v59_v20  ;;  %v1601_v25 = vpack.c.bf16 %v62_v24, %v61_v23  ;;  %v46_v26 = vld [vmem:[#allocation3] sm:$0xff]  ;;  %v137_v31 = vld [vmem:[#allocation3 + $0x8] sm:$0xff]  ;;  %v229_v36 = vld [vmem:[#allocation3 + $0x10] sm:$0xff]  ;;  %p1482_p5 = por %p1481_p4, %p1480_p3 }
  0x2d   :  { %v321_v41 = vld [vmem:[#allocation3 + $0x18] sm:$0xff]  ;;  %v413_v46 = vld [vmem:[#allocation3 + $0x20] sm:$0xff]  ;;  %v505_v51 = vld [vmem:[#allocation3 + $0x28] sm:$0xff] }
  0x2e   :  { %1220 = vmatpush3.bf16.msra.mxu0 %v1565_v7  ;;  %1244 = vmatpush3.bf16.msra.mxu1 %v1565_v7  ;;  %v597_v56 = vld [vmem:[#allocation3 + $0x30] sm:$0xff]  ;;  %v689_v61 = vld [vmem:[#allocation3 + $0x38] sm:$0xff]  ;;  %p1483_p6 = pnand %p1482_p5, %p1476_p2 }
  0x2f   :  { %1221 = vmatprep.subr.bf16.mxu0 %v1507_v0  ;;  %1245 = vmatprep.subr.bf16.mxu1 %v1507_v0 }
  0x32   :  { %1223 = vmatpush3.bf16.msra.mxu0 %v1571_v10  ;;  %1247 = vmatpush3.bf16.msra.mxu1 %v1571_v10 }
  0x33   :  { %1224 = vmatprep.subr.bf16.mxu0 %v1507_v0  ;;  %1248 = vmatprep.subr.bf16.mxu1 %v1507_v0 }
  0x36   :  { %1226 = vmatpush3.bf16.msra.mxu0 %v1577_v13  ;;  %1250 = vmatpush3.bf16.msra.mxu1 %v1577_v13 }
  0x37   :  { %1227 = vmatprep.subr.bf16.mxu0 %v1507_v0  ;;  %1251 = vmatprep.subr.bf16.mxu1 %v1507_v0 }
  0x3a   :  { %1229 = vmatpush3.bf16.msra.mxu0 %v1583_v16  ;;  %1253 = vmatpush3.bf16.msra.mxu1 %v1583_v16 }
  0x3b   :  { %1230 = vmatprep.subr.bf16.mxu0 %v1507_v0  ;;  %1254 = vmatprep.subr.bf16.mxu1 %v1507_v0 }
  0x3e   :  { %1232 = vmatpush3.bf16.msra.mxu0 %v1589_v19  ;;  %1256 = vmatpush3.bf16.msra.mxu1 %v1589_v19 }
  0x3f   :  { %1233 = vmatprep.subr.bf16.mxu0 %v1507_v0  ;;  %1257 = vmatprep.subr.bf16.mxu1 %v1507_v0 }
  0x42   :  { %1235 = vmatpush3.bf16.msra.mxu0 %v1595_v22  ;;  %1259 = vmatpush3.bf16.msra.mxu1 %v1595_v22 }
  0x43   :  { %1236 = vmatprep.subr.bf16.mxu0 %v1507_v0  ;;  %1260 = vmatprep.subr.bf16.mxu1 %v1507_v0 }
  0x46   :  { %1238 = vmatpush3.bf16.msra.mxu0 %v1601_v25  ;;  %1262 = vmatpush3.bf16.msra.mxu1 %v1601_v25 }
  0x47   :  { %1263 = vmatprep.subr.bf16.mxu0 %v1507_v0  ;;  %1287 = vmatprep.subr.bf16.mxu1 %v1507_v0 }
  0x49   :  { %968 = vmatmul.mubr.f32.vlgmr.msra.gmra.mrb[0].mxu0 %v1509_v1 }
  0x4a   :  { %1265 = vmatpush3.bf16.msra.mxu0 %v1562_v5  ;;  %1037 = vmatprep.mubr.msk.f32.mxu0 %vm1508_vm0, %v1509_v1 }
  0x4b   :  { %1266 = vmatprep.subr.bf16.mxu0 %v1507_v0 }
  0x4e   :  { %1268 = vmatpush3.bf16.msra.mxu0 %v1565_v7 }
  0x4f   :  { %1269 = vmatprep.subr.bf16.mxu0 %v1507_v0 }
  0x52   :  { %1271 = vmatpush3.bf16.msra.mxu0 %v1571_v10 }
  0x53   :  { %1272 = vmatprep.subr.bf16.mxu0 %v1507_v0 }
  0x56   :  { %1274 = vmatpush3.bf16.msra.mxu0 %v1577_v13 }
  0x57   :  { %1275 = vmatprep.subr.bf16.mxu0 %v1507_v0 }
  0x5a   :  { %1277 = vmatpush3.bf16.msra.mxu0 %v1583_v16 }
  0x5b   :  { %1278 = vmatprep.subr.bf16.mxu0 %v1507_v0 }
  0x5e   :  { %1280 = vmatpush3.bf16.msra.mxu0 %v1589_v19 }
  0x5f   :  { %1281 = vmatprep.subr.bf16.mxu0 %v1507_v0 }
  0x62   :  { %1283 = vmatpush3.bf16.msra.mxu0 %v1595_v22 }
  0x63   :  { %1284 = vmatprep.subr.bf16.mxu0 %v1507_v0 }
  0x66   :  { %1286 = vmatpush3.bf16.msra.mxu0 %v1601_v25 }
  0x67   :  { %1311 = vmatprep.subr.bf16.mxu0 %v1507_v0 }
 0x11c   :  { %v129_v27 = vpop.f32.mrb[0].mxu0 }
 0x11d   :  { %v133_v28 = vadd.f32 %v129_v27, %v46_v26  ;;  %v969_v29 = vpop.f32.mrb[1].mxu0 }
 0x11f   :  { %1415 = vtanh.f32 %v133_v28 }
 0x129   :  { %v1416_v30 = vpop.eup %1415 }
 0x12a   :  { %135 = vst [vmem:[#allocation8] sm:$0xff] %v1416_v30  ;;  %1003 = vmatmul.mubr.f32.vlgmr.msra.gmra.mrb[0].mxu1 %v1416_v30 }
 0x12b   :  { %1289 = vmatpush3.bf16.msra.mxu1 %v1562_v5  ;;  %1072 = vmatprep.mubr.msk.f32.mxu1 %vm1508_vm0, %v1509_v1 }
 0x12c   :  { %1290 = vmatprep.subr.bf16.mxu1 %v1507_v0 }
 0x12f   :  { %1292 = vmatpush3.bf16.msra.mxu1 %v1565_v7 }
 0x130   :  { %1293 = vmatprep.subr.bf16.mxu1 %v1507_v0 }
 0x133   :  { %1295 = vmatpush3.bf16.msra.mxu1 %v1571_v10 }
 0x134   :  { %1296 = vmatprep.subr.bf16.mxu1 %v1507_v0 }
 0x137   :  { %1298 = vmatpush3.bf16.msra.mxu1 %v1577_v13 }
 0x138   :  { %1299 = vmatprep.subr.bf16.mxu1 %v1507_v0 }
 0x13b   :  { %1301 = vmatpush3.bf16.msra.mxu1 %v1583_v16 }
 0x13c   :  { %1302 = vmatprep.subr.bf16.mxu1 %v1507_v0 }
 0x13f   :  { %1304 = vmatpush3.bf16.msra.mxu1 %v1589_v19 }
 0x140   :  { %1305 = vmatprep.subr.bf16.mxu1 %v1507_v0 }
 0x143   :  { %1307 = vmatpush3.bf16.msra.mxu1 %v1595_v22 }
 0x144   :  { %1308 = vmatprep.subr.bf16.mxu1 %v1507_v0 }
 0x147   :  { %1310 = vmatpush3.bf16.msra.mxu1 %v1601_v25 }
 0x148   :  { %1335 = vmatprep.subr.bf16.mxu1 %v1507_v0 }
 0x1fd   :  { %v220_v32 = vpop.f32.mrb[0].mxu1 }
 0x1fe   :  { %v224_v33 = vadd.f32 %v220_v32, %v137_v31  ;;  %v1004_v34 = vpop.f32.mrb[1].mxu1 }
 0x200   :  { %1417 = vtanh.f32 %v224_v33 }
 0x20a   :  { %v1418_v35 = vpop.eup %1417 }
 0x20b   :  { %227 = vst [vmem:[#allocation8 + $0x8] sm:$0xff] %v1418_v35  ;;  %1038 = vmatmul.mubr.f32.vlgmr.msra.gmra.mrb[2].mxu0 %v1418_v35 }
 0x20c   :  { %1313 = vmatpush3.bf16.msra.mxu0 %v1562_v5  ;;  %1107 = vmatprep.mubr.msk.f32.mxu0 %vm1508_vm0, %v1509_v1 }
 0x20d   :  { %1314 = vmatprep.subr.bf16.mxu0 %v1507_v0 }
 0x210   :  { %1316 = vmatpush3.bf16.msra.mxu0 %v1565_v7 }
 0x211   :  { %1317 = vmatprep.subr.bf16.mxu0 %v1507_v0 }
 0x214   :  { %1319 = vmatpush3.bf16.msra.mxu0 %v1571_v10 }
 0x215   :  { %1320 = vmatprep.subr.bf16.mxu0 %v1507_v0 }
 0x218   :  { %1322 = vmatpush3.bf16.msra.mxu0 %v1577_v13 }
 0x219   :  { %1323 = vmatprep.subr.bf16.mxu0 %v1507_v0 }
 0x21c   :  { %1325 = vmatpush3.bf16.msra.mxu0 %v1583_v16 }
 0x21d   :  { %1326 = vmatprep.subr.bf16.mxu0 %v1507_v0 }
 0x220   :  { %1328 = vmatpush3.bf16.msra.mxu0 %v1589_v19 }
 0x221   :  { %1329 = vmatprep.subr.bf16.mxu0 %v1507_v0 }
 0x224   :  { %1331 = vmatpush3.bf16.msra.mxu0 %v1595_v22 }
 0x225   :  { %1332 = vmatprep.subr.bf16.mxu0 %v1507_v0 }
 0x228   :  { %1334 = vmatpush3.bf16.msra.mxu0 %v1601_v25 }
 0x229   :  { %1359 = vmatprep.subr.bf16.mxu0 %v1507_v0 }
 0x2de   :  { %v312_v37 = vpop.f32.mrb[2].mxu0 }
 0x2df   :  { %v316_v38 = vadd.f32 %v312_v37, %v229_v36  ;;  %v1039_v39 = vpop.f32.mrb[3].mxu0 }
 0x2e1   :  { %1419 = vtanh.f32 %v316_v38 }
 0x2eb   :  { %v1420_v40 = vpop.eup %1419 }
 0x2ec   :  { %319 = vst [vmem:[#allocation8 + $0x10] sm:$0xff] %v1420_v40  ;;  %1073 = vmatmul.mubr.f32.vlgmr.msra.gmra.mrb[2].mxu1 %v1420_v40 }
 0x2ed   :  { %1337 = vmatpush3.bf16.msra.mxu1 %v1562_v5  ;;  %1142 = vmatprep.mubr.msk.f32.mxu1 %vm1508_vm0, %v1509_v1 }
 0x2ee   :  { %1338 = vmatprep.subr.bf16.mxu1 %v1507_v0 }
 0x2f1   :  { %1340 = vmatpush3.bf16.msra.mxu1 %v1565_v7 }
 0x2f2   :  { %1341 = vmatprep.subr.bf16.mxu1 %v1507_v0 }
 0x2f5   :  { %1343 = vmatpush3.bf16.msra.mxu1 %v1571_v10 }
 0x2f6   :  { %1344 = vmatprep.subr.bf16.mxu1 %v1507_v0 }
 0x2f9   :  { %1346 = vmatpush3.bf16.msra.mxu1 %v1577_v13 }
 0x2fa   :  { %1347 = vmatprep.subr.bf16.mxu1 %v1507_v0 }
 0x2fd   :  { %1349 = vmatpush3.bf16.msra.mxu1 %v1583_v16 }
 0x2fe   :  { %1350 = vmatprep.subr.bf16.mxu1 %v1507_v0 }
 0x301   :  { %1352 = vmatpush3.bf16.msra.mxu1 %v1589_v19 }
 0x302   :  { %1353 = vmatprep.subr.bf16.mxu1 %v1507_v0 }
 0x305   :  { %1355 = vmatpush3.bf16.msra.mxu1 %v1595_v22 }
 0x306   :  { %1356 = vmatprep.subr.bf16.mxu1 %v1507_v0 }
 0x309   :  { %1358 = vmatpush3.bf16.msra.mxu1 %v1601_v25 }
 0x30a   :  { %1383 = vmatprep.subr.bf16.mxu1 %v1507_v0 }
 0x3bf   :  { %v404_v42 = vpop.f32.mrb[2].mxu1 }
 0x3c0   :  { %v408_v43 = vadd.f32 %v404_v42, %v321_v41  ;;  %v1074_v44 = vpop.f32.mrb[3].mxu1 }
 0x3c2   :  { %1421 = vtanh.f32 %v408_v43 }
 0x3cc   :  { %v1422_v45 = vpop.eup %1421 }
 0x3cd   :  { %411 = vst [vmem:[#allocation8 + $0x18] sm:$0xff] %v1422_v45  ;;  %1108 = vmatmul.mubr.f32.vlgmr.msra.gmra.mrb[4].mxu0 %v1422_v45 }
 0x3ce   :  { %1361 = vmatpush3.bf16.msra.mxu0 %v1562_v5  ;;  %1177 = vmatprep.mubr.msk.f32.mxu0 %vm1508_vm0, %v1509_v1 }
 0x3cf   :  { %1362 = vmatprep.subr.bf16.mxu0 %v1507_v0 }
 0x3d2   :  { %1364 = vmatpush3.bf16.msra.mxu0 %v1565_v7 }
 0x3d3   :  { %1365 = vmatprep.subr.bf16.mxu0 %v1507_v0 }
 0x3d6   :  { %1367 = vmatpush3.bf16.msra.mxu0 %v1571_v10 }
 0x3d7   :  { %1368 = vmatprep.subr.bf16.mxu0 %v1507_v0 }
 0x3da   :  { %1370 = vmatpush3.bf16.msra.mxu0 %v1577_v13 }
 0x3db   :  { %1371 = vmatprep.subr.bf16.mxu0 %v1507_v0 }
 0x3de   :  { %1373 = vmatpush3.bf16.msra.mxu0 %v1583_v16 }
 0x3df   :  { %1374 = vmatprep.subr.bf16.mxu0 %v1507_v0 }
 0x3e2   :  { %1376 = vmatpush3.bf16.msra.mxu0 %v1589_v19 }
 0x3e3   :  { %1377 = vmatprep.subr.bf16.mxu0 %v1507_v0 }
 0x3e6   :  { %1379 = vmatpush3.bf16.msra.mxu0 %v1595_v22 }
 0x3e7   :  { %1380 = vmatprep.subr.bf16.mxu0 %v1507_v0 }
 0x3ea   :  { %1382 = vmatpush3.bf16.msra.mxu0 %v1601_v25 }
 0x4a0   :  { %v496_v47 = vpop.f32.mrb[4].mxu0 }
 0x4a1   :  { %v500_v48 = vadd.f32 %v496_v47, %v413_v46  ;;  %v1109_v49 = vpop.f32.mrb[5].mxu0 }
 0x4a3   :  { %1423 = vtanh.f32 %v500_v48 }
 0x4ad   :  { %v1424_v50 = vpop.eup %1423 }
 0x4ae   :  { %503 = vst [vmem:[#allocation8 + $0x20] sm:$0xff] %v1424_v50  ;;  %1143 = vmatmul.mubr.f32.vlgmr.msra.gmra.mrb[4].mxu1 %v1424_v50 }
 0x4af   :  { %1385 = vmatpush3.bf16.msra.mxu1 %v1562_v5  ;;  %1212 = vmatprep.mubr.msk.f32.mxu1 %vm1508_vm0, %v1509_v1 }
 0x4b0   :  { %1386 = vmatprep.subr.bf16.mxu1 %v1507_v0 }
 0x4b3   :  { %1388 = vmatpush3.bf16.msra.mxu1 %v1565_v7 }
 0x4b4   :  { %1389 = vmatprep.subr.bf16.mxu1 %v1507_v0 }
 0x4b7   :  { %1391 = vmatpush3.bf16.msra.mxu1 %v1571_v10 }
 0x4b8   :  { %1392 = vmatprep.subr.bf16.mxu1 %v1507_v0 }
 0x4bb   :  { %1394 = vmatpush3.bf16.msra.mxu1 %v1577_v13 }
 0x4bc   :  { %1395 = vmatprep.subr.bf16.mxu1 %v1507_v0 }
 0x4bf   :  { %1397 = vmatpush3.bf16.msra.mxu1 %v1583_v16 }
 0x4c0   :  { %1398 = vmatprep.subr.bf16.mxu1 %v1507_v0 }
 0x4c3   :  { %1400 = vmatpush3.bf16.msra.mxu1 %v1589_v19 }
 0x4c4   :  { %1401 = vmatprep.subr.bf16.mxu1 %v1507_v0 }
 0x4c7   :  { %1403 = vmatpush3.bf16.msra.mxu1 %v1595_v22 }
 0x4c8   :  { %1404 = vmatprep.subr.bf16.mxu1 %v1507_v0 }
 0x4cb   :  { %1406 = vmatpush3.bf16.msra.mxu1 %v1601_v25 }
 0x581   :  { %v588_v52 = vpop.f32.mrb[4].mxu1 }
 0x582   :  { %v592_v53 = vadd.f32 %v588_v52, %v505_v51  ;;  %v1144_v54 = vpop.f32.mrb[5].mxu1 }
 0x584   :  { %1425 = vtanh.f32 %v592_v53 }
 0x58e   :  { %v1426_v55 = vpop.eup %1425 }
 0x58f   :  { %595 = vst [vmem:[#allocation8 + $0x28] sm:$0xff] %v1426_v55  ;;  %1178 = vmatmul.mubr.f32.vlgmr.msra.gmra.mrb[6].mxu0 %v1426_v55 }
 0x662   :  { %v680_v57 = vpop.f32.mrb[6].mxu0 }
 0x663   :  { %v684_v58 = vadd.f32 %v680_v57, %v597_v56  ;;  %v1179_v59 = vpop.f32.mrb[7].mxu0 }
 0x665   :  { %1427 = vtanh.f32 %v684_v58 }
 0x66f   :  { %v1428_v60 = vpop.eup %1427 }
 0x670   :  { %687 = vst [vmem:[#allocation8 + $0x30] sm:$0xff] %v1428_v60  ;;  %1213 = vmatmul.mubr.f32.vlgmr.msra.gmra.mrb[6].mxu1 %v1428_v60 }
 0x743   :  { %v772_v62 = vpop.f32.mrb[6].mxu1 }
 0x744   :  { %v776_v63 = vadd.f32 %v772_v62, %v689_v61  ;;  %v1214_v0 = vpop.f32.mrb[7].mxu1 }
 0x746   :  { %1429 = vtanh.f32 %v776_v63 }
 0x750   :  { %v1430_v1 = vpop.eup %1429 }
 0x751   :  { %779 = vst [vmem:[#allocation8 + $0x38] sm:$0xff] %v1430_v1 }
 0x752   :  { %1486 = shalt.err (!%p1483_p6)
}
 0x753   :  { %s1487_s10 = scalar_lea.hbm %s1734_s2, 1024 }
 0x754   :  { %p1488_p7 = scmp.ne.s32.totalorder %s1734_s2, %s1487_s10  ;;  %p1491_p8 = scmp.lt.u32.totalorder %s1487_s10, %s1734_s2 }
 0x756   :  { %p1493_p9 = pnand %p1491_p8, %p1488_p7 }
 0x758   :  { %1496 = shalt.err (!%p1493_p9)
}
 0x759   :  { %792 = dma.vmem_to_hbm [thread:$0]  %s787_s6, 1024, %s1734_s2, [#allocation5], %s1504_s19, %s1504_s19, %s1505_s20  }
 0x75a   :  { %1501 = dma.done.wait [#allocation5], 1024  }
 0x75b   :  { %1502 = vsyncadd [#allocation5], 4294966272 }
 0x75c   :  { %796 = vsyncpa [#allocation4], 1 }
 0x75d   :  { %797 = vsyncpa [#allocation7], 1 }
 0x75e   :  { %798 = vsyncpa [#allocation5], 1 }

</bundles_post_ra>
